<compile_context>
chip_gen: v5e
topology: v5e:2x2
jax: 0.10.0
libtpu: 0.0.40
codegen_flags: <defaults>
</compile_context>

<pallas_src>
import jax
import jax.numpy as jnp
from jax.experimental import pallas as pl
from jax.experimental.pallas import tpu as pltpu

LANE_CANDIDATES = (1024, 512, 256, 128)   # lane widths (multiples of 128)
TARGET_BLOCK_BYTES = 2 * 1024 * 1024      # ~2 MiB/block -> ~8 MiB resident
MIN_BLOCKS = 4                            # >=4 grid steps when rows >= 16


def _round_up(a: int, b: int) -> int:
    return ((a + b - 1) // b) * b


def _trainable_tanh_kernel(coeff_ref, x_ref, o_ref):
    # coeff_ref: (1, 1) f32 in SMEM; x_ref / o_ref: (tile_rows, lane) VMEM tiles.
    x = x_ref[...]
    if x.dtype in (jnp.dtype(jnp.float32), jnp.dtype(jnp.bfloat16)):
        compute_dtype = x.dtype          # bf16 stays bf16 on v6e/v7x (no casts)
    else:
        compute_dtype = jnp.float32      # exotic dtypes: compute in f32
    # Broadcast the f32 scalar once per tile, then cast to the compute dtype.
    c = jnp.full((1, 1), coeff_ref[0, 0], dtype=jnp.float32).astype(compute_dtype)
    o_ref[...] = jnp.tanh(x.astype(compute_dtype) * c).astype(o_ref.dtype)


def trainable_tanh(x: jax.Array, coeff: jax.Array) -> jax.Array:
    """out = tanh(coeff * x); x is any shape (NCHW typical), coeff is a scalar."""
    orig_shape = x.shape
    orig_dtype = x.dtype
    total = int(x.size)
    itemsize = jnp.dtype(orig_dtype).itemsize

    # ---- lane width: largest candidate dividing total (no pad in common case)
    lane = next((c for c in LANE_CANDIDATES if total % c == 0), None)
    padded_total = total
    if lane is None:
        # Rare fallback (x.size not a multiple of 128): pad the flat tail only.
        lane = 128
        padded_total = _round_up(total, lane)

    flat = x.reshape(-1)
    if padded_total != total:
        flat = jnp.pad(flat, (0, padded_total - total))
    rows = padded_total // lane
    x2d = flat.reshape(rows, lane)

    # ---- balanced row tiling; Pallas masks the partial final block ---------
    if rows < 16:
        tile_rows = rows                  # single full-extent block (tiny input)
    else:
        target_rows = max(8, (TARGET_BLOCK_BYTES // itemsize) // lane)
        nblocks = max(MIN_BLOCKS, pl.cdiv(rows, target_rows))
        tile_rows = max(8, _round_up(pl.cdiv(rows, nblocks), 8))
    grid = (pl.cdiv(rows, tile_rows),)

    # coeff stays f32 in SMEM (never quantize the learned parameter).
    coeff_smem = jnp.asarray(coeff, dtype=jnp.float32).reshape(1, 1)

    out2d = pl.pallas_call(
        _trainable_tanh_kernel,
        out_shape=jax.ShapeDtypeStruct((rows, lane), orig_dtype),
        grid=grid,
        in_specs=[
            pl.BlockSpec(memory_space=pltpu.SMEM),                # scalar coeff
            pl.BlockSpec((tile_rows, lane), lambda i: (i, 0)),    # x row-tile
        ],
        out_specs=pl.BlockSpec((tile_rows, lane), lambda i: (i, 0)),
        compiler_params=pltpu.CompilerParams(
            dimension_semantics=("parallel",),                    # both TCs on v7x
        ),
        cost_estimate=pl.CostEstimate(
            flops=padded_total,
            transcendentals=padded_total,
            bytes_accessed=2 * padded_total * itemsize,
        ),
    )(coeff_smem, x2d)

    out_flat = out2d.reshape(-1)
    if padded_total != total:
        out_flat = out_flat[:total]
    return out_flat.reshape(orig_shape)


if __name__ == "__main__":
    key = jax.random.PRNGKey(0)

    # Small NCHW input consistent with a conv-net activation.
    x = jax.random.normal(key, (2, 4, 16, 16), dtype=jnp.float32)

    # Deterministic parameter init (module __init__ takes init_coeff).
    init_coeff = 1.5
    coeff = jnp.asarray(init_coeff, dtype=jnp.float32)

    out = trainable_tanh(x, coeff)
    out = jax.block_until_ready(out)

    # Correctness check against plain-JAX reference of the PyTorch forward.
    ref = jnp.tanh(coeff * x)
    assert out.shape == x.shape
    assert out.dtype == x.dtype
    assert jnp.allclose(out, ref, atol=1e-6), "mismatch vs reference"

    print("KERNEL_OK")
</pallas_src>

<mosaic_0001>
module attributes {stable_mosaic.version = 11 : i64} {
  func.func @_trainable_tanh_kernel(%arg0: i32, %arg1: memref<1x1xf32, #tpu.memory_space<smem>>, %arg2: memref<2x1024xf32, #tpu.memory_space<vmem>>, %arg3: memref<2x1024xf32, #tpu.memory_space<vmem>>) attributes {dimension_semantics = [#tpu.dimension_semantics<parallel>], iteration_bounds = array<i64: 1>, scalar_prefetch = 0 : i64, scratch_operands = 0 : i64, tpu.core_type = #tpu.core_type<tc>, window_params = [{transform_indices = @transform_0, window_bounds = array<i64: 1, 1>}, {transform_indices = @transform_1, window_bounds = array<i64: 2, 1024>}, {transform_indices = @transform_2, window_bounds = array<i64: 2, 1024>}]} {
    %c0 = arith.constant 0 : index
    %c0_0 = arith.constant 0 : index
    %0 = vector.load %arg2[%c0, %c0_0] : memref<2x1024xf32, #tpu.memory_space<vmem>>, vector<2x1024xf32>
    %c0_1 = arith.constant 0 : index
    %c0_2 = arith.constant 0 : index
    %1 = memref.load %arg1[%c0_1, %c0_2] : memref<1x1xf32, #tpu.memory_space<smem>>
    %2 = vector.broadcast %1 : f32 to vector<1x1xf32>
    %3 = vector.broadcast %2 : vector<1x1xf32> to vector<2x1024xf32>
    %4 = arith.mulf %0, %3 : vector<2x1024xf32>
    %5 = math.tanh %4 : vector<2x1024xf32>
    %c0_3 = arith.constant 0 : index
    %c0_4 = arith.constant 0 : index
    %6 = vector.load %arg3[%c0_3, %c0_4] : memref<2x1024xf32, #tpu.memory_space<vmem>>, vector<2x1024xf32>
    tpu.vector_store %arg3[%c0_3, %c0_4], %5 {strides = array<i32>} : memref<2x1024xf32, #tpu.memory_space<vmem>>, vector<2x1024xf32>,
    return
  }
  func.func @transform_0(%arg0: i32) -> (i32, i32) {
    %c0_i32 = arith.constant 0 : i32
    %c0_i32_0 = arith.constant 0 : i32
    %c0_i32_1 = arith.constant 0 : i32
    return %c0_i32, %c0_i32_0 : i32, i32
  }
  func.func @transform_1(%arg0: i32) -> (i32, i32) {
    %c0_i32 = arith.constant 0 : i32
    %c0_i32_0 = arith.constant 0 : i32
    return %arg0, %c0_i32 : i32, i32
  }
  func.func @transform_2(%arg0: i32) -> (i32, i32) {
    %c0_i32 = arith.constant 0 : i32
    %c0_i32_0 = arith.constant 0 : i32
    return %arg0, %c0_i32 : i32, i32
  }
}

</mosaic_0001>

<bundles_post_ra>
// kernel: tpu_custom_call.1
= control target key start
LH: loop header
LB: loop body
LE: loop exit
PB: predicated region body
PF: predicated region fallthrough
CT: control target
= control target key end

     0   :  { %8 = vsyncpa [#allocation4], 0  ;;  %s138_s0 = inlined_call_operand.<no memory space> [shape: f32[1,1], index: 0, kind: input, shape index: {}]   ;;  %s139_s1 = inlined_call_operand.hbm [shape: f32[2,1024], index: 1, kind: input, shape index: {}]   ;;  %s140_s2 = inlined_call_operand.hbm [shape: f32[2,1024], index: 2, kind: output, shape index: {}]  }
   0x1   :  { %9 = vsyncpa [#allocation5], 0  ;;  %s17_s11 = sshll.u32 %s139_s1, 4  ;;  %s112_s12 = smov [#allocation3]   ;;  %s18_s11 = int_to_ptr.hbm [resolvable:$true] %s17_s11 }
   0x2   :  { %s19_s13 = sshll.u32 %s112_s12, 4  ;;  %s20_s13 = int_to_ptr.vmem [resolvable:$true] %s19_s13 }
   0x3   :  { %22 = dma.hbm_to_vmem [thread:$0]  %s18_s11, 256, %s20_s13, [#allocation4]  }
   0x4   :  { %108 = dma.done.wait [#allocation4], 256  }
   0x5   :  { %109 = vsyncadd [#allocation4], 4294967040  ;;  %v30_v0 = vstv %s138_s0  ;;  %v27_v1 = vld [vmem:[#allocation3] sm:$0xff]  ;;  %v28_v2 = vld [vmem:[#allocation3 + $0x8] sm:$0xff]  ;;  %s113_s16 = smov [#allocation6]   ;;  %s44_s19 = sshll.u32 %s140_s2, 4  ;;  %s45_s19 = int_to_ptr.hbm [resolvable:$true] %s44_s19 }
   0x6   :  { %v31_v3 = vmul.f32 %v30_v0, %v27_v1  ;;  %v32_v4 = vmul.f32 %v30_v0, %v28_v2  ;;  %s42_s17 = sshll.u32 %s113_s16, 4  ;;  %s43_s17 = int_to_ptr.vmem [resolvable:$true] %s42_s17 }
   0x8   :  { %56 = vtanh.f32 %v31_v3 }
   0x9   :  { %58 = vtanh.f32 %v32_v4 }
   0xe   :  { %v57_v5 = vpop.eup %56 }
   0xf   :  { %v59_v6 = vpop.eup %58  ;;  %35 = vst [vmem:[#allocation6] sm:$0xff] %v57_v5 }
  0x10   :  { %36 = vst [vmem:[#allocation6 + $0x8] sm:$0xff] %v59_v6 }
  0x11   :  { %47 = dma.vmem_to_hbm [thread:$0]  %s43_s17, 256, %s45_s19, [#allocation5]  }
  0x12   :  { %110 = dma.done.wait [#allocation5], 256  }
  0x13   :  { %111 = vsyncadd [#allocation5], 4294967040 }
  0x14   :  { %52 = vsyncpa [#allocation4], 1 }
  0x15   :  { %53 = vsyncpa [#allocation5], 1 }

</bundles_post_ra>
